<compile_context>
chip_gen: v6e
topology: v6e:2x2x1
jax: 0.10.0
libtpu: 0.0.40
codegen_flags: <defaults>
</compile_context>

<pallas_src>
import jax
import jax.numpy as jnp
from jax.experimental import pallas as pl
from jax.experimental.pallas import tpu as pltpu

LANES = 128  # pad width; all layer widths of this module (<=4*layers_factor) must fit in it


def _make_kernel(tb, T, offs):
    """Build the fused kernel with static batch-tile size, timestep count and slab offsets."""
    (o_ew1, o_eb1, o_ew2, o_eb2, o_ew3, o_eb3, o_ew4, o_eb4,
     o_pw, o_dw1, o_db1, o_dw2, o_db2, o_dw3, o_db3, o_dw4, o_db4) = offs
    P = LANES
    f32 = jnp.float32

    def kernel(x0_ref, tp_ref, slab_ref, out_ref):
        # static, tile-aligned views into the packed weight slab
        def W(o):   # (128, 128) weight block
            return slab_ref[o:o + P, :]

        def Bv(o):  # (1, 128) bias row
            return slab_ref[o:o + 1, :]

        # ----- encoder: (TB,128) -> z0 (TB,128)  (real data in the first L lanes) -----
        h = x0_ref[...]
        h = jnp.maximum(jnp.dot(h, W(o_ew1), preferred_element_type=f32) + Bv(o_eb1), 0.0)
        h = jnp.maximum(jnp.dot(h, W(o_ew2), preferred_element_type=f32) + Bv(o_eb2), 0.0)
        h = jnp.maximum(jnp.dot(h, W(o_ew3), preferred_element_type=f32) + Bv(o_eb3), 0.0)
        z0 = jnp.tanh(jnp.dot(h, W(o_ew4), preferred_element_type=f32) + Bv(o_eb4))

        # ----- polynomial: prepare_t(t) @ coef^T as a single dot: (T,128)@(128,128) -----
        poly = jnp.dot(tp_ref[...], W(o_pw), preferred_element_type=f32)       # (T, 128)

        # ----- latent trajectory: z_pred = poly_out + z0.unsqueeze(1) -----
        z = (z0[:, None, :] + poly[None, :, :]).reshape(tb * T, P)             # (TB*T, 128)

        # ----- decoder: (TB*T,128) -> (TB*T,128)  (real data in the first Q lanes) -----
        h = jnp.maximum(jnp.dot(z, W(o_dw1), preferred_element_type=f32) + Bv(o_db1), 0.0)
        h = jnp.maximum(jnp.dot(h, W(o_dw2), preferred_element_type=f32) + Bv(o_db2), 0.0)
        h = jnp.maximum(jnp.dot(h, W(o_dw3), preferred_element_type=f32) + Bv(o_db3), 0.0)
        y = jnp.tanh(jnp.dot(h, W(o_dw4), preferred_element_type=f32) + Bv(o_db4))

        out_ref[...] = y.astype(out_ref.dtype)                                  # lane-dense store

    return kernel


def _pack_weights(weights):
    """Pack all weights/biases into one zero-padded (rows, 128) f32 slab.

    Weight matrices (in,out) are padded to (128,128); biases (1,out) to (8,128).
    Returns (slab, static row offsets)."""
    P = LANES
    blocks, offsets, off = [], [], 0
    for w in weights:
        w = jnp.asarray(w, jnp.float32)
        rin, rout = w.shape
        assert rin <= P and rout <= P, "layer width exceeds 128-lane padding"
        nrows = 8 if rin == 1 else P
        blocks.append(jnp.zeros((nrows, P), jnp.float32).at[:rin, :rout].set(w))
        offsets.append(off)
        off += nrows
    return jnp.concatenate(blocks, axis=0), tuple(offsets)


def _pick_batch_tile(batch):
    """Batch-tile heuristic: MXU-aligned M, >=2 grid steps when possible (v7x megacore)."""
    if batch >= 512:
        return 256                                   # fills v6e/v7x 256-wide MXU
    if batch >= 256:
        return 128                                   # 128-aligned (v5e MXU)
    if batch >= 16:
        return max(8, (batch // 2) // 8 * 8)         # ~2 grid steps, 8-aligned
    return batch                                     # tiny batch: single grid step


def polynomial_model_forward(x, t_range, weights, *, batch_tile=None):
    """x: (B, T, Q), t_range: (T,), weights: [ew1,eb1,...,ew4,eb4, pw, dw1,db1,...,dw4,db4]
    with every Linear weight pre-transposed to (in, out), biases (1, out), pw (degree, L)."""
    B, T, Q = x.shape
    P = LANES
    assert Q <= P

    tb = batch_tile if batch_tile is not None else _pick_batch_tile(B)
    tb = max(1, min(tb, B))
    n_tiles = -(-B // tb)
    Bp = n_tiles * tb

    # x0 = x[:, 0, :] pre-sliced and zero-padded to 128 lanes (and to Bp rows).
    x0 = x[:, 0, :].astype(jnp.float32)
    x0p = jnp.zeros((Bp, P), jnp.float32).at[:B, :Q].set(x0)

    # Power matrix [t^1 .. t^degree], zero-padded to 128 lanes.
    degree = weights[8].shape[0]
    t_col = t_range.astype(jnp.float32).reshape(T, 1)
    powers = jnp.concatenate([t_col ** i for i in range(1, degree + 1)], axis=1)   # (T, deg)
    tp = jnp.zeros((T, P), jnp.float32).at[:, :degree].set(powers)

    # Single packed weight slab.
    slab, offs = _pack_weights(weights)
    slab_rows = slab.shape[0]

    kernel = _make_kernel(tb, T, offs)

    out = pl.pallas_call(
        kernel,
        out_shape=jax.ShapeDtypeStruct((Bp * T, P), jnp.float32),
        grid=(n_tiles,),
        in_specs=[
            pl.BlockSpec((tb, P), lambda b: (b, 0)),            # x0 batch tile
            pl.BlockSpec((T, P), lambda b: (0, 0)),             # power matrix (shared)
            pl.BlockSpec((slab_rows, P), lambda b: (0, 0)),     # weight slab (grid-invariant)
        ],
        out_specs=pl.BlockSpec((tb * T, P), lambda b: (b, 0)),  # lane-dense (128-wide) output
        compiler_params=pltpu.CompilerParams(dimension_semantics=("parallel",)),
    )(x0p, tp, slab)

    # Strip batch padding and lane padding in plain XLA.
    return out.reshape(Bp, T, P)[:B, :, :Q]


def init_weights(key, n_quantities=4, latent_features=5, layers_factor=8, degree=3):
    """Deterministic init mimicking torch.nn.Linear (U[-1/sqrt(fan_in), 1/sqrt(fan_in)]).
    Weights returned already transposed to (in, out); biases as (1, out)."""
    coder = [4 * layers_factor, 2 * layers_factor, 1 * layers_factor]
    enc_dims = [n_quantities] + coder + [latent_features]        # Q -> 32 -> 16 -> 8 -> L
    dec_dims = [latent_features] + coder[::-1] + [n_quantities]  # L -> 8 -> 16 -> 32 -> Q

    def linear(k, fin, fout, bias=True):
        kw, kb = jax.random.split(k)
        bound = 1.0 / float(jnp.sqrt(jnp.float32(fin)))
        W = jax.random.uniform(kw, (fin, fout), jnp.float32, -bound, bound)
        if not bias:
            return (W,)
        b = jax.random.uniform(kb, (1, fout), jnp.float32, -bound, bound)
        return (W, b)

    keys = jax.random.split(key, 9)
    weights = []
    for i in range(4):                                   # encoder layers
        weights += list(linear(keys[i], enc_dims[i], enc_dims[i + 1]))
    weights += list(linear(keys[4], degree, latent_features, bias=False))  # poly coef (deg, L)
    for i in range(4):                                   # decoder layers
        weights += list(linear(keys[5 + i], dec_dims[i], dec_dims[i + 1]))
    return weights


def _reference_forward(x, t_range, weights):
    """Pure-JAX reference (same math, float32) for a correctness check."""
    (ew1, eb1, ew2, eb2, ew3, eb3, ew4, eb4, pw,
     dw1, db1, dw2, db2, dw3, db3, dw4, db4) = weights
    x0 = x[:, 0, :]
    h = jax.nn.relu(x0 @ ew1 + eb1)
    h = jax.nn.relu(h @ ew2 + eb2)
    h = jax.nn.relu(h @ ew3 + eb3)
    z0 = jnp.tanh(h @ ew4 + eb4)
    t = t_range.reshape(-1, 1)
    powers = jnp.concatenate([t ** i for i in range(1, pw.shape[0] + 1)], axis=1)
    poly = powers @ pw                                   # (T, L)
    z = z0[:, None, :] + poly[None, :, :]                # (B, T, L)
    h = jax.nn.relu(z @ dw1 + db1)
    h = jax.nn.relu(h @ dw2 + db2)
    h = jax.nn.relu(h @ dw3 + db3)
    return jnp.tanh(h @ dw4 + db4)


if __name__ == "__main__":
    # Small shapes consistent with the module: batch=2, timesteps=8, n_quantities=4,
    # latent_features=5, layers_factor=8 (-> widths [32,16,8]), degree=3.
    B, T, Q = 2, 8, 4
    key = jax.random.PRNGKey(0)
    k_x, k_w = jax.random.split(key)

    x = jax.random.normal(k_x, (B, T, Q), dtype=jnp.float32)
    t_range = jnp.linspace(0.0, 1.0, T, dtype=jnp.float32)
    weights = init_weights(k_w, n_quantities=Q, latent_features=5, layers_factor=8, degree=3)

    out = polynomial_model_forward(x, t_range, weights)
    out = jax.block_until_ready(out)
    assert out.shape == (B, T, Q) and out.dtype == jnp.float32

    ref = jax.block_until_ready(_reference_forward(x, t_range, weights))
    err = float(jnp.max(jnp.abs(out - ref)))
    assert err < 5e-4, f"kernel vs reference mismatch: max abs err {err}"

    print("KERNEL_OK")
</pallas_src>

<mosaic_0001>
module attributes {stable_mosaic.version = 11 : i64} {
  func.func @kernel(%arg0: i32, %arg1: memref<2x128xf32, #tpu.memory_space<vmem>>, %arg2: memref<8x128xf32, #tpu.memory_space<vmem>>, %arg3: memref<1216x128xf32, #tpu.memory_space<vmem>>, %arg4: memref<16x128xf32, #tpu.memory_space<vmem>>) attributes {dimension_semantics = [#tpu.dimension_semantics<parallel>], iteration_bounds = array<i64: 1>, scalar_prefetch = 0 : i64, scratch_operands = 0 : i64, tpu.core_type = #tpu.core_type<tc>, window_params = [{transform_indices = @transform_0, window_bounds = array<i64: 2, 128>}, {pipeline_mode = #tpu.pipeline_mode<synchronous>, transform_indices = @transform_1, window_bounds = array<i64: 8, 128>}, {pipeline_mode = #tpu.pipeline_mode<synchronous>, transform_indices = @transform_2, window_bounds = array<i64: 1216, 128>}, {transform_indices = @transform_3, window_bounds = array<i64: 16, 128>}]} {
    %c0 = arith.constant 0 : index
    %c0_0 = arith.constant 0 : index
    %0 = vector.load %arg1[%c0, %c0_0] : memref<2x128xf32, #tpu.memory_space<vmem>>, vector<2x128xf32>
    %c0_1 = arith.constant 0 : index
    %c0_2 = arith.constant 0 : index
    %1 = vector.load %arg3[%c0_1, %c0_2] : memref<1216x128xf32, #tpu.memory_space<vmem>>, vector<128x128xf32>
    %cst = arith.constant dense<0.000000e+00> : vector<2x128xf32>
    %2 = tpu.matmul %0, %1, %cst {dimension_numbers = #tpu.dot_dimension_numbers<[1], [0], [0], [1], [0, 0, 1, 1], [], []>} : vector<2x128xf32>, vector<128x128xf32>, vector<2x128xf32> -> vector<2x128xf32>
    %c128 = arith.constant 128 : index
    %c0_3 = arith.constant 0 : index
    %3 = vector.load %arg3[%c128, %c0_3] : memref<1216x128xf32, #tpu.memory_space<vmem>>, vector<1x128xf32>
    %4 = vector.broadcast %3 : vector<1x128xf32> to vector<2x128xf32>
    %5 = arith.addf %2, %4 : vector<2x128xf32>
    %cst_4 = arith.constant 0.000000e+00 : f32
    %6 = vector.broadcast %cst_4 : f32 to vector<2x128xf32>
    %7 = arith.maximumf %5, %6 : vector<2x128xf32>
    %c136 = arith.constant 136 : index
    %c0_5 = arith.constant 0 : index
    %8 = vector.load %arg3[%c136, %c0_5] : memref<1216x128xf32, #tpu.memory_space<vmem>>, vector<128x128xf32>
    %cst_6 = arith.constant dense<0.000000e+00> : vector<2x128xf32>
    %9 = tpu.matmul %7, %8, %cst_6 {dimension_numbers = #tpu.dot_dimension_numbers<[1], [0], [0], [1], [0, 0, 1, 1], [], []>} : vector<2x128xf32>, vector<128x128xf32>, vector<2x128xf32> -> vector<2x128xf32>
    %c264 = arith.constant 264 : index
    %c0_7 = arith.constant 0 : index
    %10 = vector.load %arg3[%c264, %c0_7] : memref<1216x128xf32, #tpu.memory_space<vmem>>, vector<1x128xf32>
    %11 = vector.broadcast %10 : vector<1x128xf32> to vector<2x128xf32>
    %12 = arith.addf %9, %11 : vector<2x128xf32>
    %cst_8 = arith.constant 0.000000e+00 : f32
    %13 = vector.broadcast %cst_8 : f32 to vector<2x128xf32>
    %14 = arith.maximumf %12, %13 : vector<2x128xf32>
    %c272 = arith.constant 272 : index
    %c0_9 = arith.constant 0 : index
    %15 = vector.load %arg3[%c272, %c0_9] : memref<1216x128xf32, #tpu.memory_space<vmem>>, vector<128x128xf32>
    %cst_10 = arith.constant dense<0.000000e+00> : vector<2x128xf32>
    %16 = tpu.matmul %14, %15, %cst_10 {dimension_numbers = #tpu.dot_dimension_numbers<[1], [0], [0], [1], [0, 0, 1, 1], [], []>} : vector<2x128xf32>, vector<128x128xf32>, vector<2x128xf32> -> vector<2x128xf32>
    %c400 = arith.constant 400 : index
    %c0_11 = arith.constant 0 : index
    %17 = vector.load %arg3[%c400, %c0_11] : memref<1216x128xf32, #tpu.memory_space<vmem>>, vector<1x128xf32>
    %18 = vector.broadcast %17 : vector<1x128xf32> to vector<2x128xf32>
    %19 = arith.addf %16, %18 : vector<2x128xf32>
    %cst_12 = arith.constant 0.000000e+00 : f32
    %20 = vector.broadcast %cst_12 : f32 to vector<2x128xf32>
    %21 = arith.maximumf %19, %20 : vector<2x128xf32>
    %c408 = arith.constant 408 : index
    %c0_13 = arith.constant 0 : index
    %22 = vector.load %arg3[%c408, %c0_13] : memref<1216x128xf32, #tpu.memory_space<vmem>>, vector<128x128xf32>
    %cst_14 = arith.constant dense<0.000000e+00> : vector<2x128xf32>
    %23 = tpu.matmul %21, %22, %cst_14 {dimension_numbers = #tpu.dot_dimension_numbers<[1], [0], [0], [1], [0, 0, 1, 1], [], []>} : vector<2x128xf32>, vector<128x128xf32>, vector<2x128xf32> -> vector<2x128xf32>
    %c536 = arith.constant 536 : index
    %c0_15 = arith.constant 0 : index
    %24 = vector.load %arg3[%c536, %c0_15] : memref<1216x128xf32, #tpu.memory_space<vmem>>, vector<1x128xf32>
    %25 = vector.broadcast %24 : vector<1x128xf32> to vector<2x128xf32>
    %26 = arith.addf %23, %25 : vector<2x128xf32>
    %27 = math.tanh %26 : vector<2x128xf32>
    %c0_16 = arith.constant 0 : index
    %c0_17 = arith.constant 0 : index
    %28 = vector.load %arg2[%c0_16, %c0_17] : memref<8x128xf32, #tpu.memory_space<vmem>>, vector<8x128xf32>
    %c544 = arith.constant 544 : index
    %c0_18 = arith.constant 0 : index
    %29 = vector.load %arg3[%c544, %c0_18] : memref<1216x128xf32, #tpu.memory_space<vmem>>, vector<128x128xf32>
    %cst_19 = arith.constant dense<0.000000e+00> : vector<8x128xf32>
    %30 = tpu.matmul %28, %29, %cst_19 {dimension_numbers = #tpu.dot_dimension_numbers<[1], [0], [0], [1], [0, 0, 1, 1], [], []>} : vector<8x128xf32>, vector<128x128xf32>, vector<8x128xf32> -> vector<8x128xf32>
    %31 = vector.shape_cast %27 : vector<2x128xf32> to vector<2x1x128xf32>
    %32 = vector.shape_cast %30 : vector<8x128xf32> to vector<1x8x128xf32>
    %33 = vector.broadcast %31 : vector<2x1x128xf32> to vector<2x8x128xf32>
    %34 = vector.broadcast %32 : vector<1x8x128xf32> to vector<2x8x128xf32>
    %35 = arith.addf %33, %34 : vector<2x8x128xf32>
    %36 = vector.shape_cast %35 : vector<2x8x128xf32> to vector<16x128xf32>
    %c672 = arith.constant 672 : index
    %c0_20 = arith.constant 0 : index
    %37 = vector.load %arg3[%c672, %c0_20] : memref<1216x128xf32, #tpu.memory_space<vmem>>, vector<128x128xf32>
    %cst_21 = arith.constant dense<0.000000e+00> : vector<16x128xf32>
    %38 = tpu.matmul %36, %37, %cst_21 {dimension_numbers = #tpu.dot_dimension_numbers<[1], [0], [0], [1], [0, 0, 1, 1], [], []>} : vector<16x128xf32>, vector<128x128xf32>, vector<16x128xf32> -> vector<16x128xf32>
    %c800 = arith.constant 800 : index
    %c0_22 = arith.constant 0 : index
    %39 = vector.load %arg3[%c800, %c0_22] : memref<1216x128xf32, #tpu.memory_space<vmem>>, vector<1x128xf32>
    %40 = vector.broadcast %39 : vector<1x128xf32> to vector<16x128xf32>
    %41 = arith.addf %38, %40 : vector<16x128xf32>
    %cst_23 = arith.constant 0.000000e+00 : f32
    %42 = vector.broadcast %cst_23 : f32 to vector<16x128xf32>
    %43 = arith.maximumf %41, %42 : vector<16x128xf32>
    %c808 = arith.constant 808 : index
    %c0_24 = arith.constant 0 : index
    %44 = vector.load %arg3[%c808, %c0_24] : memref<1216x128xf32, #tpu.memory_space<vmem>>, vector<128x128xf32>
    %cst_25 = arith.constant dense<0.000000e+00> : vector<16x128xf32>
    %45 = tpu.matmul %43, %44, %cst_25 {dimension_numbers = #tpu.dot_dimension_numbers<[1], [0], [0], [1], [0, 0, 1, 1], [], []>} : vector<16x128xf32>, vector<128x128xf32>, vector<16x128xf32> -> vector<16x128xf32>
    %c936 = arith.constant 936 : index
    %c0_26 = arith.constant 0 : index
    %46 = vector.load %arg3[%c936, %c0_26] : memref<1216x128xf32, #tpu.memory_space<vmem>>, vector<1x128xf32>
    %47 = vector.broadcast %46 : vector<1x128xf32> to vector<16x128xf32>
    %48 = arith.addf %45, %47 : vector<16x128xf32>
    %cst_27 = arith.constant 0.000000e+00 : f32
    %49 = vector.broadcast %cst_27 : f32 to vector<16x128xf32>
    %50 = arith.maximumf %48, %49 : vector<16x128xf32>
    %c944 = arith.constant 944 : index
    %c0_28 = arith.constant 0 : index
    %51 = vector.load %arg3[%c944, %c0_28] : memref<1216x128xf32, #tpu.memory_space<vmem>>, vector<128x128xf32>
    %cst_29 = arith.constant dense<0.000000e+00> : vector<16x128xf32>
    %52 = tpu.matmul %50, %51, %cst_29 {dimension_numbers = #tpu.dot_dimension_numbers<[1], [0], [0], [1], [0, 0, 1, 1], [], []>} : vector<16x128xf32>, vector<128x128xf32>, vector<16x128xf32> -> vector<16x128xf32>
    %c1072 = arith.constant 1072 : index
    %c0_30 = arith.constant 0 : index
    %53 = vector.load %arg3[%c1072, %c0_30] : memref<1216x128xf32, #tpu.memory_space<vmem>>, vector<1x128xf32>
    %54 = vector.broadcast %53 : vector<1x128xf32> to vector<16x128xf32>
    %55 = arith.addf %52, %54 : vector<16x128xf32>
    %cst_31 = arith.constant 0.000000e+00 : f32
    %56 = vector.broadcast %cst_31 : f32 to vector<16x128xf32>
    %57 = arith.maximumf %55, %56 : vector<16x128xf32>
    %c1080 = arith.constant 1080 : index
    %c0_32 = arith.constant 0 : index
    %58 = vector.load %arg3[%c1080, %c0_32] : memref<1216x128xf32, #tpu.memory_space<vmem>>, vector<128x128xf32>
    %cst_33 = arith.constant dense<0.000000e+00> : vector<16x128xf32>
    %59 = tpu.matmul %57, %58, %cst_33 {dimension_numbers = #tpu.dot_dimension_numbers<[1], [0], [0], [1], [0, 0, 1, 1], [], []>} : vector<16x128xf32>, vector<128x128xf32>, vector<16x128xf32> -> vector<16x128xf32>
    %c1208 = arith.constant 1208 : index
    %c0_34 = arith.constant 0 : index
    %60 = vector.load %arg3[%c1208, %c0_34] : memref<1216x128xf32, #tpu.memory_space<vmem>>, vector<1x128xf32>
    %61 = vector.broadcast %60 : vector<1x128xf32> to vector<16x128xf32>
    %62 = arith.addf %59, %61 : vector<16x128xf32>
    %63 = math.tanh %62 : vector<16x128xf32>
    %c0_35 = arith.constant 0 : index
    %c0_36 = arith.constant 0 : index
    %64 = vector.load %arg4[%c0_35, %c0_36] : memref<16x128xf32, #tpu.memory_space<vmem>>, vector<16x128xf32>
    tpu.vector_store %arg4[%c0_35, %c0_36], %63 {strides = array<i32>} : memref<16x128xf32, #tpu.memory_space<vmem>>, vector<16x128xf32>,
    return
  }
  func.func @transform_0(%arg0: i32) -> (i32, i32) {
    %c0_i32 = arith.constant 0 : i32
    %c0_i32_0 = arith.constant 0 : i32
    return %arg0, %c0_i32 : i32, i32
  }
  func.func @transform_1(%arg0: i32) -> (i32, i32) {
    %c0_i32 = arith.constant 0 : i32
    %c0_i32_0 = arith.constant 0 : i32
    %c0_i32_1 = arith.constant 0 : i32
    return %c0_i32, %c0_i32_0 : i32, i32
  }
  func.func @transform_2(%arg0: i32) -> (i32, i32) {
    %c0_i32 = arith.constant 0 : i32
    %c0_i32_0 = arith.constant 0 : i32
    %c0_i32_1 = arith.constant 0 : i32
    return %c0_i32, %c0_i32_0 : i32, i32
  }
  func.func @transform_3(%arg0: i32) -> (i32, i32) {
    %c0_i32 = arith.constant 0 : i32
    %c0_i32_0 = arith.constant 0 : i32
    return %arg0, %c0_i32 : i32, i32
  }
}

</mosaic_0001>

<bundles_post_ra>
// kernel: tpu_custom_call.1
= control target key start
LH: loop header
LB: loop body
LE: loop exit
PB: predicated region body
PF: predicated region fallthrough
CT: control target
= control target key end

     0   :  { %8 = vsyncpa [#allocation3], 0  ;;  %s1677_s0 = inlined_call_operand.hbm [shape: f32[2,128], index: 0, kind: input, shape index: {}]   ;;  %s1678_s1 = inlined_call_operand.hbm [shape: f32[8,128], index: 1, kind: input, shape index: {}]   ;;  %s1679_s2 = inlined_call_operand.hbm [shape: f32[1216,128], index: 2, kind: input, shape index: {}]   ;;  %s1680_s3 = inlined_call_operand.hbm [shape: f32[16,128], index: 3, kind: output, shape index: {}]  }
   0x1   :  { %9 = vsyncpa [#allocation6], 0 }
   0x2   :  { %10 = vsyncpa [#allocation4], 0  ;;  %s1536_s12 = smov [#allocation5]   ;;  %s1537_s14 = smov [#allocation2]  }
   0x3   :  { %s27_s13 = sshll.u32 %s1536_s12, 4  ;;  %s17_s15 = sshll.u32 %s1537_s14, 4  ;;  %s28_s13 = int_to_ptr.vmem [resolvable:$true] %s27_s13  ;;  %s18_s15 = int_to_ptr.vmem [resolvable:$true] %s17_s15 }
   0x4   :  { %s1458_s16 = scalar_lea.vmem %s28_s13, 128  ;;  %p1463_p1 = scmp.lt.s32.totalorder %s28_s13, %s28_s13 }
   0x5   :  { %p1459_p0 = scmp.ne.s32.totalorder %s28_s13, %s1458_s16  ;;  %p1464_p2 = scmp.lt.s32.totalorder %s1458_s16, %s1458_s16 }
   0x7   :  { %p1465_p3 = por %p1464_p2, %p1463_p1 }
   0x9   :  { %p1466_p4 = pnand %p1465_p3, %p1459_p0 }
   0xb   :  { %1469 = shalt.err (!%p1466_p4)
}
   0xc   :  { %30 = dma.hbm_to_vmem [thread:$0]  %s1678_s1, 128, %s28_s13, [#allocation6]  }
   0xd   :  { %s1478_s19 = scalar_lea.vmem %s18_s15, 32  ;;  %p1483_p6 = scmp.lt.s32.totalorder %s18_s15, %s18_s15 }
   0xe   :  { %p1479_p5 = scmp.ne.s32.totalorder %s18_s15, %s1478_s19  ;;  %p1484_p7 = scmp.lt.s32.totalorder %s1478_s19, %s1478_s19 }
  0x10   :  { %p1485_p8 = por %p1484_p7, %p1483_p6 }
  0x12   :  { %p1486_p9 = pnand %p1485_p8, %p1479_p5 }
  0x14   :  { %1489 = shalt.err (!%p1486_p9)
}
  0x15   :  { %20 = dma.hbm_to_vmem [thread:$0]  %s1677_s0, 32, %s18_s15, [#allocation3]  }
  0x16   :  { %s1538_s22 = smov [#allocation7]  }
  0x17   :  { %s36_s23 = sshll.u32 %s1538_s22, 4  ;;  %s37_s23 = int_to_ptr.vmem [resolvable:$true] %s36_s23 }
  0x18   :  { %s1498_s24 = scalar_lea.vmem %s37_s23, 19456  ;;  %p1503_p11 = scmp.lt.s32.totalorder %s37_s23, %s37_s23 }
  0x19   :  { %p1499_p10 = scmp.ne.s32.totalorder %s37_s23, %s1498_s24  ;;  %p1504_p12 = scmp.lt.s32.totalorder %s1498_s24, %s1498_s24 }
  0x1b   :  { %p1505_p13 = por %p1504_p12, %p1503_p11 }
  0x1d   :  { %p1506_p0 = pnand %p1505_p13, %p1499_p10 }
  0x1f   :  { %1509 = shalt.err (!%p1506_p0)
}
  0x20   :  { %s1539_s1 = smov 128   ;;  %s1540_s25 = smov 8  }
  0x21   :  { %42 = dma.hbm_to_vmem [thread:$0]  %s1679_s2, 19456, %s37_s23, [#allocation6], %s1539_s1, %s1539_s1, %s1540_s25  }
  0x22   :  { %1530 = dma.done.wait [#allocation3], 32  }
  0x23   :  { %1531 = vsyncadd [#allocation3], 4294967264 }
  0x24   :  { %1532 = dma.done.wait [#allocation6], 19584  }
  0x25   :  { %1533 = vsyncadd [#allocation6], 4294947712  ;;  %v1541_v0 = vmov 0.0   ;;  %vm1542_vm0 = vmmov 0   ;;  %v68_v1 = vld [vmem:[#allocation7 + $0x78] sm:$0xff]  ;;  %v67_v2 = vld [vmem:[#allocation7 + $0x70] sm:$0xff] }
  0x26   :  { %1120 = vmatprep.subr.mxu0 %v1541_v0  ;;  %1152 = vmatprep.mubr.msk.f32.mxu0 %vm1542_vm0, %v1541_v0  ;;  %v66_v3 = vld [vmem:[#allocation7 + $0x68] sm:$0xff]  ;;  %v65_v4 = vld [vmem:[#allocation7 + $0x60] sm:$0xff]  ;;  %v64_v6 = vld [vmem:[#allocation7 + $0x58] sm:$0xff]  ;;  %s1544_s0 = smov [#allocation8]  }
  0x27   :  { %1155 = vmatprep.subr.mxu1 %v1541_v0  ;;  %1187 = vmatprep.mubr.msk.f32.mxu1 %vm1542_vm0, %v1541_v0  ;;  %v160_v5 = vld [vmem:[#allocation7 + $0x100] sm:$0xff]  ;;  %v159_v7 = vld [vmem:[#allocation7 + $0xf8] sm:$0xff]  ;;  %v158_v8 = vld [vmem:[#allocation7 + $0xf0] sm:$0xff]  ;;  %s942_s2 = sshll.u32 %s1544_s0, 4  ;;  %s943_s2 = int_to_ptr.vmem [resolvable:$true] %s942_s2 }
  0x28   :  { %1121 = vmatpush3.msra.mxu0 %v68_v1  ;;  %1156 = vmatpush3.msra.mxu1 %v160_v5  ;;  %v63_v9 = vld [vmem:[#allocation7 + $0x50] sm:$0xff]  ;;  %v157_v10 = vld [vmem:[#allocation7 + $0xe8] sm:$0xff]  ;;  %v156_v12 = vld [vmem:[#allocation7 + $0xe0] sm:$0xff]  ;;  %s1510_s28 = scalar_lea.vmem %s943_s2, 256  ;;  %p1515_p2 = scmp.lt.s32.totalorder %s943_s2, %s943_s2 }
  0x29   :  { %1122 = vmatprep.subr.mxu0 %v1541_v0  ;;  %1157 = vmatprep.subr.mxu1 %v1541_v0  ;;  %v62_v11 = vld [vmem:[#allocation7 + $0x48] sm:$0xff]  ;;  %v61_v13 = vld [vmem:[#allocation7 + $0x40] sm:$0xff]  ;;  %v155_v14 = vld [vmem:[#allocation7 + $0xd8] sm:$0xff]  ;;  %p1511_p1 = scmp.ne.s32.totalorder %s943_s2, %s1510_s28  ;;  %p1516_p3 = scmp.lt.s32.totalorder %s1510_s28, %s1510_s28 }
  0x2a   :  { %1123 = vmatpush3.msra.mxu0 %v67_v2  ;;  %1158 = vmatpush3.msra.mxu1 %v159_v7  ;;  %v60_v15 = vld [vmem:[#allocation7 + $0x38] sm:$0xff]  ;;  %v154_v16 = vld [vmem:[#allocation7 + $0xd0] sm:$0xff]  ;;  %v153_v18 = vld [vmem:[#allocation7 + $0xc8] sm:$0xff] }
  0x2b   :  { %1124 = vmatprep.subr.mxu0 %v1541_v0  ;;  %1159 = vmatprep.subr.mxu1 %v1541_v0  ;;  %v59_v17 = vld [vmem:[#allocation7 + $0x30] sm:$0xff]  ;;  %v58_v19 = vld [vmem:[#allocation7 + $0x28] sm:$0xff]  ;;  %v152_v20 = vld [vmem:[#allocation7 + $0xc0] sm:$0xff]  ;;  %p1517_p4 = por %p1516_p3, %p1515_p2 }
  0x2c   :  { %1125 = vmatpush3.msra.mxu0 %v66_v3  ;;  %1160 = vmatpush3.msra.mxu1 %v158_v8  ;;  %v57_v21 = vld [vmem:[#allocation7 + $0x20] sm:$0xff]  ;;  %v151_v22 = vld [vmem:[#allocation7 + $0xb8] sm:$0xff]  ;;  %v150_v24 = vld [vmem:[#allocation7 + $0xb0] sm:$0xff] }
  0x2d   :  { %1126 = vmatprep.subr.mxu0 %v1541_v0  ;;  %1161 = vmatprep.subr.mxu1 %v1541_v0  ;;  %v56_v23 = vld [vmem:[#allocation7 + $0x18] sm:$0xff]  ;;  %v55_v25 = vld [vmem:[#allocation7 + $0x10] sm:$0xff]  ;;  %v149_v26 = vld [vmem:[#allocation7 + $0xa8] sm:$0xff]  ;;  %p1518_p5 = pnand %p1517_p4, %p1511_p1 }
  0x2e   :  { %1127 = vmatpush3.msra.mxu0 %v65_v4  ;;  %1162 = vmatpush3.msra.mxu1 %v157_v10  ;;  %v54_v27 = vld [vmem:[#allocation7 + $0x8] sm:$0xff]  ;;  %v148_v28 = vld [vmem:[#allocation7 + $0xa0] sm:$0xff]  ;;  %v52_v30 = vld [vmem:[#allocation2] sm:$0x3] }
  0x2f   :  { %1128 = vmatprep.subr.mxu0 %v1541_v0  ;;  %1163 = vmatprep.subr.mxu1 %v1541_v0  ;;  %v53_v29 = vld [vmem:[#allocation7] sm:$0xff]  ;;  %v147_v31 = vld [vmem:[#allocation7 + $0x98] sm:$0xff]  ;;  %v146_v32 = vld [vmem:[#allocation7 + $0x90] sm:$0xff] }
  0x30   :  { %1129 = vmatpush3.msra.mxu0 %v64_v6  ;;  %1164 = vmatpush3.msra.mxu1 %v156_v12  ;;  %v145_v33 = vld [vmem:[#allocation7 + $0x88] sm:$0xff]  ;;  %v251_v35 = vld [vmem:[#allocation7 + $0x180] sm:$0xff]  ;;  %v250_v36 = vld [vmem:[#allocation7 + $0x178] sm:$0xff] }
  0x31   :  { %1130 = vmatprep.subr.mxu0 %v1541_v0  ;;  %1165 = vmatprep.subr.mxu1 %v1541_v0  ;;  %v252_v34 = vld [vmem:[#allocation7 + $0x188] sm:$0xff]  ;;  %v249_v37 = vld [vmem:[#allocation7 + $0x170] sm:$0xff]  ;;  %v247_v39 = vld [vmem:[#allocation7 + $0x160] sm:$0xff] }
  0x32   :  { %1131 = vmatpush3.msra.mxu0 %v63_v9  ;;  %1166 = vmatpush3.msra.mxu1 %v155_v14  ;;  %v248_v38 = vld [vmem:[#allocation7 + $0x168] sm:$0xff]  ;;  %v246_v40 = vld [vmem:[#allocation7 + $0x158] sm:$0xff]  ;;  %v245_v41 = vld [vmem:[#allocation7 + $0x150] sm:$0xff] }
  0x33   :  { %1132 = vmatprep.subr.mxu0 %v1541_v0  ;;  %1167 = vmatprep.subr.mxu1 %v1541_v0  ;;  %v244_v42 = vld [vmem:[#allocation7 + $0x148] sm:$0xff]  ;;  %v243_v43 = vld [vmem:[#allocation7 + $0x140] sm:$0xff]  ;;  %v242_v44 = vld [vmem:[#allocation7 + $0x138] sm:$0xff] }
  0x34   :  { %1133 = vmatpush3.msra.mxu0 %v62_v11  ;;  %1168 = vmatpush3.msra.mxu1 %v154_v16  ;;  %v241_v45 = vld [vmem:[#allocation7 + $0x130] sm:$0xff]  ;;  %v240_v46 = vld [vmem:[#allocation7 + $0x128] sm:$0xff]  ;;  %v955_v47 = vld [vmem:[#allocation7 + $0x80] ss:$0 sm:$0xff] }
  0x35   :  { %1134 = vmatprep.subr.mxu0 %v1541_v0  ;;  %1169 = vmatprep.subr.mxu1 %v1541_v0  ;;  %v239_v52 = vld [vmem:[#allocation7 + $0x120] sm:$0xff]  ;;  %v238_v53 = vld [vmem:[#allocation7 + $0x118] sm:$0xff]  ;;  %v237_v54 = vld [vmem:[#allocation7 + $0x110] sm:$0xff] }
  0x36   :  { %1135 = vmatpush3.msra.mxu0 %v61_v13  ;;  %1170 = vmatpush3.msra.mxu1 %v153_v18  ;;  %v344_v55 = vld [vmem:[#allocation7 + $0x210] sm:$0xff]  ;;  %v343_v56 = vld [vmem:[#allocation7 + $0x208] sm:$0xff]  ;;  %v342_v57 = vld [vmem:[#allocation7 + $0x200] sm:$0xff] }
  0x37   :  { %1136 = vmatprep.subr.mxu0 %v1541_v0  ;;  %1171 = vmatprep.subr.mxu1 %v1541_v0  ;;  %v341_v58 = vld [vmem:[#allocation7 + $0x1f8] sm:$0xff]  ;;  %v340_v59 = vld [vmem:[#allocation7 + $0x1f0] sm:$0xff]  ;;  %v339_v60 = vld [vmem:[#allocation7 + $0x1e8] sm:$0xff] }
  0x38   :  { %1137 = vmatpush3.msra.mxu0 %v60_v15  ;;  %1172 = vmatpush3.msra.mxu1 %v152_v20  ;;  %v338_v61 = vld [vmem:[#allocation7 + $0x1e0] sm:$0xff]  ;;  %v337_v62 = vld [vmem:[#allocation7 + $0x1d8] sm:$0xff]  ;;  %v336_v63 = vld [vmem:[#allocation7 + $0x1d0] sm:$0xff] }
  0x39   :  { %1138 = vmatprep.subr.mxu0 %v1541_v0  ;;  %1173 = vmatprep.subr.mxu1 %v1541_v0  ;;  %v335_v1 = vld [vmem:[#allocation7 + $0x1c8] sm:$0xff]  ;;  %v334_v2 = vld [vmem:[#allocation7 + $0x1c0] sm:$0xff]  ;;  %v333_v3 = vld [vmem:[#allocation7 + $0x1b8] sm:$0xff] }
  0x3a   :  { %1139 = vmatpush3.msra.mxu0 %v59_v17  ;;  %1174 = vmatpush3.msra.mxu1 %v151_v22  ;;  %v332_v4 = vld [vmem:[#allocation7 + $0x1b0] sm:$0xff]  ;;  %v956_v5 = vld [vmem:[#allocation7 + $0x108] ss:$0 sm:$0xff]  ;;  %v437_v10 = vld [vmem:[#allocation7 + $0x298] sm:$0xff] }
  0x3b   :  { %1140 = vmatprep.subr.mxu0 %v1541_v0  ;;  %1175 = vmatprep.subr.mxu1 %v1541_v0  ;;  %v436_v11 = vld [vmem:[#allocation7 + $0x290] sm:$0xff]  ;;  %v435_v12 = vld [vmem:[#allocation7 + $0x288] sm:$0xff]  ;;  %v434_v14 = vld [vmem:[#allocation7 + $0x280] sm:$0xff] }
  0x3c   :  { %1141 = vmatpush3.msra.mxu0 %v58_v19  ;;  %1176 = vmatpush3.msra.mxu1 %v150_v24  ;;  %v331_v13 = vld [vmem:[#allocation7 + $0x1a8] sm:$0xff]  ;;  %v330_v15 = vld [vmem:[#allocation7 + $0x1a0] sm:$0xff]  ;;  %v433_v16 = vld [vmem:[#allocation7 + $0x278] sm:$0xff] }
  0x3d   :  { %1142 = vmatprep.subr.mxu0 %v1541_v0  ;;  %1177 = vmatprep.subr.mxu1 %v1541_v0  ;;  %v329_v17 = vld [vmem:[#allocation7 + $0x198] sm:$0xff]  ;;  %v432_v18 = vld [vmem:[#allocation7 + $0x270] sm:$0xff]  ;;  %v431_v19 = vld [vmem:[#allocation7 + $0x268] sm:$0xff] }
  0x3e   :  { %1143 = vmatpush3.msra.mxu0 %v57_v21  ;;  %1178 = vmatpush3.msra.mxu1 %v149_v26  ;;  %v430_v20 = vld [vmem:[#allocation7 + $0x260] sm:$0xff]  ;;  %v429_v21 = vld [vmem:[#allocation7 + $0x258] sm:$0xff]  ;;  %v427_v24 = vld [vmem:[#allocation7 + $0x248] sm:$0xff] }
  0x3f   :  { %1144 = vmatprep.subr.mxu0 %v1541_v0  ;;  %1179 = vmatprep.subr.mxu1 %v1541_v0  ;;  %v558_v22 = vld [vmem:[#allocation7 + $0x318] sm:$0xff] }
  0x40   :  { %1145 = vmatpush3.msra.mxu0 %v56_v23  ;;  %1180 = vmatpush3.msra.mxu1 %v148_v28  ;;  %v428_v23 = vld [vmem:[#allocation7 + $0x250] sm:$0xff]  ;;  %v425_v26 = vld [vmem:[#allocation7 + $0x238] sm:$0xff]  ;;  %v423_v28 = vld [vmem:[#allocation7 + $0x228] sm:$0xff] }
  0x41   :  { %1146 = vmatprep.subr.mxu0 %v1541_v0  ;;  %1181 = vmatprep.subr.mxu1 %v1541_v0 }
  0x42   :  { %1147 = vmatpush3.msra.mxu0 %v55_v25  ;;  %1182 = vmatpush3.msra.mxu1 %v147_v31  ;;  %v426_v25 = vld [vmem:[#allocation7 + $0x240] sm:$0xff]  ;;  %v957_v31 = vld [vmem:[#allocation7 + $0x190] ss:$0 sm:$0xff] }
  0x43   :  { %1148 = vmatprep.subr.mxu0 %v1541_v0  ;;  %1183 = vmatprep.subr.mxu1 %v1541_v0 }
  0x44   :  { %1149 = vmatpush3.msra.mxu0 %v54_v27  ;;  %1184 = vmatpush3.msra.mxu1 %v146_v32  ;;  %v424_v27 = vld [vmem:[#allocation7 + $0x230] sm:$0xff] }
  0x45   :  { %1150 = vmatprep.subr.mxu0 %v1541_v0  ;;  %1185 = vmatprep.subr.mxu1 %v1541_v0 }
  0x46   :  { %1151 = vmatpush3.msra.mxu0 %v53_v29  ;;  %1186 = vmatpush3.msra.mxu1 %v145_v33  ;;  %v422_v29 = vld [vmem:[#allocation7 + $0x220] sm:$0xff] }
  0x47   :  { %1153 = vmatmul.mubr.f32.vlgmr.msra.gmra.mxu0 %v52_v30  ;;  %1190 = vmatprep.subr.mxu0 %v1541_v0  ;;  %v421_v30 = vld [vmem:[#allocation5] sm:$0xff] }
  0x48   :  { %1222 = vmatprep.mubr.msk.f32.mxu0 %vm1542_vm0, %v1541_v0  ;;  %1225 = vmatprep.subr.mxu1 %v1541_v0 }
  0x49   :  { %1191 = vmatpush3.msra.mxu0 %v252_v34 }
  0x4a   :  { %1192 = vmatprep.subr.mxu0 %v1541_v0 }
  0x4b   :  { %1193 = vmatpush3.msra.mxu0 %v251_v35 }
  0x4c   :  { %1194 = vmatprep.subr.mxu0 %v1541_v0 }
  0x4d   :  { %1195 = vmatpush3.msra.mxu0 %v250_v36  ;;  %v557_v36 = vld [vmem:[#allocation7 + $0x310] sm:$0xff] }
  0x4e   :  { %1196 = vmatprep.subr.mxu0 %v1541_v0 }
  0x4f   :  { %1197 = vmatpush3.msra.mxu0 %v249_v37  ;;  %v556_v37 = vld [vmem:[#allocation7 + $0x308] sm:$0xff] }
  0x50   :  { %1198 = vmatprep.subr.mxu0 %v1541_v0 }
  0x51   :  { %1199 = vmatpush3.msra.mxu0 %v248_v38  ;;  %v555_v38 = vld [vmem:[#allocation7 + $0x300] sm:$0xff] }
  0x52   :  { %1200 = vmatprep.subr.mxu0 %v1541_v0 }
  0x53   :  { %1201 = vmatpush3.msra.mxu0 %v247_v39  ;;  %v554_v39 = vld [vmem:[#allocation7 + $0x2f8] sm:$0xff] }
  0x54   :  { %1202 = vmatprep.subr.mxu0 %v1541_v0 }
  0x55   :  { %1203 = vmatpush3.msra.mxu0 %v246_v40  ;;  %v552_v40 = vld [vmem:[#allocation7 + $0x2e8] sm:$0xff] }
  0x56   :  { %1204 = vmatprep.subr.mxu0 %v1541_v0 }
  0x57   :  { %1205 = vmatpush3.msra.mxu0 %v245_v41  ;;  %v551_v41 = vld [vmem:[#allocation7 + $0x2e0] sm:$0xff] }
  0x58   :  { %1206 = vmatprep.subr.mxu0 %v1541_v0 }
  0x59   :  { %1207 = vmatpush3.msra.mxu0 %v244_v42  ;;  %v550_v42 = vld [vmem:[#allocation7 + $0x2d8] sm:$0xff] }
  0x5a   :  { %1208 = vmatprep.subr.mxu0 %v1541_v0 }
  0x5b   :  { %1209 = vmatpush3.msra.mxu0 %v243_v43  ;;  %v549_v43 = vld [vmem:[#allocation7 + $0x2d0] sm:$0xff] }
  0x5c   :  { %1210 = vmatprep.subr.mxu0 %v1541_v0 }
  0x5d   :  { %1211 = vmatpush3.msra.mxu0 %v242_v44  ;;  %v548_v44 = vld [vmem:[#allocation7 + $0x2c8] sm:$0xff] }
  0x5e   :  { %1212 = vmatprep.subr.mxu0 %v1541_v0 }
  0x5f   :  { %1213 = vmatpush3.msra.mxu0 %v241_v45  ;;  %v547_v45 = vld [vmem:[#allocation7 + $0x2c0] sm:$0xff] }
  0x60   :  { %1214 = vmatprep.subr.mxu0 %v1541_v0 }
  0x61   :  { %1215 = vmatpush3.msra.mxu0 %v240_v46  ;;  %v546_v46 = vld [vmem:[#allocation7 + $0x2b8] sm:$0xff] }
  0x62   :  { %1216 = vmatprep.subr.mxu0 %v1541_v0 }
  0x63   :  { %1217 = vmatpush3.msra.mxu0 %v239_v52  ;;  %v656_v52 = vld [vmem:[#allocation7 + $0x3a0] sm:$0xff] }
  0x64   :  { %1218 = vmatprep.subr.mxu0 %v1541_v0 }
  0x65   :  { %1219 = vmatpush3.msra.mxu0 %v238_v53  ;;  %v655_v53 = vld [vmem:[#allocation7 + $0x398] sm:$0xff] }
  0x66   :  { %1220 = vmatprep.subr.mxu0 %v1541_v0 }
  0x67   :  { %1221 = vmatpush3.msra.mxu0 %v237_v54  ;;  %v654_v54 = vld [vmem:[#allocation7 + $0x390] sm:$0xff] }
  0x68   :  { %1260 = vmatprep.subr.mxu0 %v1541_v0 }
 0x107   :  { %v140_v48 = vpop.f32.mrf.mxu0 }
 0x108   :  { %v141_v49 = vadd.f32 %v955_v47, %v140_v48  ;;  %v545_v47 = vld [vmem:[#allocation7 + $0x2b0] sm:$0xff] }
 0x109   :  { %v1154_v50 = vpop.f32.mrf.mxu0 }
 0x10a   :  { %v144_v51 = vmax.f32 %v141_v49, 0.0  ;;  %v544_v49 = vld [vmem:[#allocation7 + $0x2a8] sm:$0xff] }
 0x10c   :  { %1188 = vmatmul.mubr.f32.vlgmr.msra.gmra.mxu1 %v144_v51  ;;  %v543_v51 = vld [vmem:[#allocation7 + $0x2a0] sm:$0xff] }
 0x10d   :  { %1257 = vmatprep.mubr.msk.f32.mxu1 %vm1542_vm0, %v1541_v0  ;;  %1226 = vmatpush3.msra.mxu1 %v344_v55  ;;  %v653_v55 = vld [vmem:[#allocation7 + $0x388] sm:$0xff] }
 0x10e   :  { %1227 = vmatprep.subr.mxu1 %v1541_v0 }
 0x10f   :  { %1228 = vmatpush3.msra.mxu1 %v343_v56  ;;  %v652_v56 = vld [vmem:[#allocation7 + $0x380] sm:$0xff] }
 0x110   :  { %1229 = vmatprep.subr.mxu1 %v1541_v0 }
 0x111   :  { %1230 = vmatpush3.msra.mxu1 %v342_v57  ;;  %v651_v57 = vld [vmem:[#allocation7 + $0x378] sm:$0xff] }
 0x112   :  { %1231 = vmatprep.subr.mxu1 %v1541_v0 }
 0x113   :  { %1232 = vmatpush3.msra.mxu1 %v341_v58  ;;  %v650_v58 = vld [vmem:[#allocation7 + $0x370] sm:$0xff] }
 0x114   :  { %1233 = vmatprep.subr.mxu1 %v1541_v0 }
 0x115   :  { %1234 = vmatpush3.msra.mxu1 %v340_v59  ;;  %v649_v59 = vld [vmem:[#allocation7 + $0x368] sm:$0xff] }
 0x116   :  { %1235 = vmatprep.subr.mxu1 %v1541_v0 }
 0x117   :  { %1236 = vmatpush3.msra.mxu1 %v339_v60  ;;  %v648_v60 = vld [vmem:[#allocation7 + $0x360] sm:$0xff] }
 0x118   :  { %1237 = vmatprep.subr.mxu1 %v1541_v0 }
 0x119   :  { %1238 = vmatpush3.msra.mxu1 %v338_v61  ;;  %v647_v61 = vld [vmem:[#allocation7 + $0x358] sm:$0xff] }
 0x11a   :  { %1239 = vmatprep.subr.mxu1 %v1541_v0 }
 0x11b   :  { %1240 = vmatpush3.msra.mxu1 %v337_v62  ;;  %v646_v62 = vld [vmem:[#allocation7 + $0x350] sm:$0xff] }
 0x11c   :  { %1241 = vmatprep.subr.mxu1 %v1541_v0 }
 0x11d   :  { %1242 = vmatpush3.msra.mxu1 %v336_v63  ;;  %v645_v63 = vld [vmem:[#allocation7 + $0x348] sm:$0xff] }
 0x11e   :  { %1243 = vmatprep.subr.mxu1 %v1541_v0 }
 0x11f   :  { %1244 = vmatpush3.msra.mxu1 %v335_v1  ;;  %v958_v1 = vld [vmem:[#allocation7 + $0x218] ss:$0 sm:$0xff] }
 0x120   :  { %1245 = vmatprep.subr.mxu1 %v1541_v0 }
 0x121   :  { %1246 = vmatpush3.msra.mxu1 %v334_v2 }
 0x122   :  { %1247 = vmatprep.subr.mxu1 %v1541_v0 }
 0x123   :  { %1248 = vmatpush3.msra.mxu1 %v333_v3 }
 0x124   :  { %1249 = vmatprep.subr.mxu1 %v1541_v0 }
 0x125   :  { %1250 = vmatpush3.msra.mxu1 %v332_v4 }
 0x126   :  { %1251 = vmatprep.subr.mxu1 %v1541_v0 }
 0x127   :  { %1252 = vmatpush3.msra.mxu1 %v331_v13 }
 0x128   :  { %1253 = vmatprep.subr.mxu1 %v1541_v0 }
 0x129   :  { %1254 = vmatpush3.msra.mxu1 %v330_v15 }
 0x12a   :  { %1255 = vmatprep.subr.mxu1 %v1541_v0 }
 0x12b   :  { %1256 = vmatpush3.msra.mxu1 %v329_v17 }
 0x12c   :  { %1295 = vmatprep.subr.mxu1 %v558_v22 }
 0x1cc   :  { %v232_v6 = vpop.f32.mrf.mxu1 }
 0x1cd   :  { %v233_v7 = vadd.f32 %v956_v5, %v232_v6  ;;  %v1543_v5 = vmov 1966171168  }
 0x1ce   :  { %v1189_v8 = vpop.f32.mrf.mxu1  ;;  %v510_v6 = vunpack.c.l.s4 %v1543_v5  ;;  %v838_v5 = vld [vmem:[#allocation7 + $0x440] sm:$0xff] }
 0x1cf   :  { %v236_v9 = vmax.f32 %v233_v7, 0.0  ;;  %v512_v7 = vlaneseq }
 0x1d0   :  { %v511_v8 = vunpack.c.0.s8 %v510_v6  ;;  %v837_v6 = vld [vmem:[#allocation7 + $0x438] sm:$0xff] }
 0x1d1   :  { %1223 = vmatmul.mubr.f32.vlgmr.msra.gmra.mxu0 %v236_v9  ;;  %v513_v9 = vshrl.u32 %v512_v7, 7  ;;  %v961_v7 = vld [vmem:[#allocation7 + $0x430] ss:$0 sm:$0xff] }
 0x1d2   :  { %1261 = vmatpush3.msra.mxu0 %v437_v10  ;;  %1292 = vmatprep.mubr.msk.f32.mxu0 %vm1542_vm0, %v1541_v0 }
 0x1d3   :  { %1262 = vmatprep.subr.mxu0 %v1541_v0  ;;  %v514_v10 = vsub.s32 %v511_v8, %v513_v9  ;;  %v533_v13 = vsub.s32 0, %v513_v9 }
 0x1d4   :  { %1263 = vmatpush3.msra.mxu0 %v436_v11 }
 0x1d5   :  { %1264 = vmatprep.subr.mxu0 %v1541_v0 }
 0x1d6   :  { %1265 = vmatpush3.msra.mxu0 %v435_v12 }
 0x1d7   :  { %1266 = vmatprep.subr.mxu0 %v1541_v0 }
 0x1d8   :  { %1267 = vmatpush3.msra.mxu0 %v434_v14 }
 0x1d9   :  { %1268 = vmatprep.subr.mxu0 %v1541_v0 }
 0x1da   :  { %1269 = vmatpush3.msra.mxu0 %v433_v16 }
 0x1db   :  { %1270 = vmatprep.subr.mxu0 %v1541_v0 }
 0x1dc   :  { %1271 = vmatpush3.msra.mxu0 %v432_v18 }
 0x1dd   :  { %1272 = vmatprep.subr.mxu0 %v1541_v0 }
 0x1de   :  { %1273 = vmatpush3.msra.mxu0 %v431_v19 }
 0x1df   :  { %1274 = vmatprep.subr.mxu0 %v1541_v0 }
 0x1e0   :  { %1275 = vmatpush3.msra.mxu0 %v430_v20 }
 0x1e1   :  { %1276 = vmatprep.subr.mxu0 %v1541_v0 }
 0x1e2   :  { %1277 = vmatpush3.msra.mxu0 %v429_v21  ;;  %v644_v21 = vld [vmem:[#allocation7 + $0x340] sm:$0xff] }
 0x1e3   :  { %1278 = vmatprep.subr.mxu0 %v1541_v0 }
 0x1e4   :  { %1279 = vmatpush3.msra.mxu0 %v428_v23  ;;  %v642_v23 = vld [vmem:[#allocation7 + $0x330] sm:$0xff] }
 0x1e5   :  { %1280 = vmatprep.subr.mxu0 %v1541_v0 }
 0x1e6   :  { %1281 = vmatpush3.msra.mxu0 %v427_v24  ;;  %v641_v24 = vld [vmem:[#allocation7 + $0x328] sm:$0xff] }
 0x1e7   :  { %1282 = vmatprep.subr.mxu0 %v1541_v0 }
 0x1e8   :  { %1283 = vmatpush3.msra.mxu0 %v426_v25  ;;  %v754_v25 = vld [vmem:[#allocation7 + $0x428] sm:$0xff] }
 0x1e9   :  { %1284 = vmatprep.subr.mxu0 %v1541_v0 }
 0x1ea   :  { %1285 = vmatpush3.msra.mxu0 %v425_v26  ;;  %v753_v26 = vld [vmem:[#allocation7 + $0x420] sm:$0xff] }
 0x1eb   :  { %1286 = vmatprep.subr.mxu0 %v1541_v0 }
 0x1ec   :  { %1287 = vmatpush3.msra.mxu0 %v424_v27  ;;  %v752_v27 = vld [vmem:[#allocation7 + $0x418] sm:$0xff] }
 0x1ed   :  { %1288 = vmatprep.subr.mxu0 %v1541_v0 }
 0x1ee   :  { %1289 = vmatpush3.msra.mxu0 %v423_v28  ;;  %v751_v28 = vld [vmem:[#allocation7 + $0x410] sm:$0xff] }
 0x1ef   :  { %1290 = vmatprep.subr.mxu0 %v1541_v0  ;;  %v553_v0 = vld [vmem:[#allocation7 + $0x2f0] sm:$0xff] }
 0x1f0   :  { %1291 = vmatpush3.msra.mxu0 %v422_v29  ;;  %v750_v29 = vld [vmem:[#allocation7 + $0x408] sm:$0xff] }
 0x1f1   :  { %1293 = vmatmul.mubr.f32.vlgmr.msra.gmra.mxu0 %v421_v30  ;;  %1330 = vmatprep.subr.mxu0 %v656_v52  ;;  %v749_v30 = vld [vmem:[#allocation7 + $0x400] sm:$0xff] }
 0x1f2   :  { %1331 = vmatpush3.msra.mxu0 %v656_v52  ;;  %v847_v52 = vld [vmem:[#allocation7 + $0x488] sm:$0xff] }
 0x1f3   :  { %1332 = vmatprep.subr.mxu0 %v655_v53 }
 0x1f4   :  { %1333 = vmatpush3.msra.mxu0 %v655_v53  ;;  %v846_v53 = vld [vmem:[#allocation7 + $0x480] sm:$0xff] }
 0x1f5   :  { %1334 = vmatprep.subr.mxu0 %v654_v54 }
 0x1f6   :  { %1335 = vmatpush3.msra.mxu0 %v654_v54  ;;  %v845_v54 = vld [vmem:[#allocation7 + $0x478] sm:$0xff] }
 0x1f7   :  { %1336 = vmatprep.subr.mxu0 %v653_v55 }
 0x1f8   :  { %1337 = vmatpush3.msra.mxu0 %v653_v55  ;;  %v844_v55 = vld [vmem:[#allocation7 + $0x470] sm:$0xff] }
 0x1f9   :  { %1338 = vmatprep.subr.mxu0 %v652_v56 }
 0x1fa   :  { %1339 = vmatpush3.msra.mxu0 %v652_v56  ;;  %v843_v56 = vld [vmem:[#allocation7 + $0x468] sm:$0xff] }
 0x1fb   :  { %1340 = vmatprep.subr.mxu0 %v651_v57 }
 0x1fc   :  { %1341 = vmatpush3.msra.mxu0 %v651_v57  ;;  %v842_v57 = vld [vmem:[#allocation7 + $0x460] sm:$0xff] }
 0x1fd   :  { %1342 = vmatprep.subr.mxu0 %v650_v58 }
 0x1fe   :  { %1343 = vmatpush3.msra.mxu0 %v650_v58  ;;  %v841_v58 = vld [vmem:[#allocation7 + $0x458] sm:$0xff] }
 0x1ff   :  { %1344 = vmatprep.subr.mxu0 %v649_v59 }
 0x200   :  { %1345 = vmatpush3.msra.mxu0 %v649_v59  ;;  %v960_v59 = vld [vmem:[#allocation7 + $0x3a8] ss:$0 sm:$0xff] }
 0x201   :  { %1346 = vmatprep.subr.mxu0 %v648_v60 }
 0x202   :  { %1347 = vmatpush3.msra.mxu0 %v648_v60 }
 0x203   :  { %1348 = vmatprep.subr.mxu0 %v647_v61 }
 0x204   :  { %1349 = vmatpush3.msra.mxu0 %v647_v61 }
 0x205   :  { %1350 = vmatprep.subr.mxu0 %v646_v62 }
 0x206   :  { %1351 = vmatpush3.msra.mxu0 %v646_v62 }
 0x207   :  { %1352 = vmatprep.subr.mxu0 %v645_v63 }
 0x208   :  { %1353 = vmatpush3.msra.mxu0 %v645_v63 }
 0x209   :  { %1354 = vmatprep.subr.mxu0 %v644_v21 }
 0x20a   :  { %1355 = vmatpush3.msra.mxu0 %v644_v21 }
 0x291   :  { %v324_v32 = vpop.f32.mrf.mxu0 }
 0x292   :  { %v325_v33 = vadd.f32 %v957_v31, %v324_v32  ;;  %v748_v31 = vld [vmem:[#allocation7 + $0x3f8] sm:$0xff]  ;;  %v747_v32 = vld [vmem:[#allocation7 + $0x3f0] sm:$0xff] }
 0x293   :  { %v1224_v34 = vpop.f32.mrf.mxu0 }
 0x294   :  { %v328_v35 = vmax.f32 %v325_v33, 0.0  ;;  %v746_v33 = vld [vmem:[#allocation7 + $0x3e8] sm:$0xff]  ;;  %v745_v34 = vld [vmem:[#allocation7 + $0x3e0] sm:$0xff] }
 0x296   :  { %1258 = vmatmul.mubr.f32.vlgmr.msra.gmra.mxu1 %v328_v35  ;;  %v744_v35 = vld [vmem:[#allocation7 + $0x3d8] sm:$0xff] }
 0x297   :  { %1296 = vmatpush3.msra.mxu1 %v558_v22  ;;  %v643_v22 = vld [vmem:[#allocation7 + $0x338] sm:$0xff] }
 0x298   :  { %1297 = vmatprep.subr.mxu1 %v557_v36  ;;  %1356 = vmatprep.subr.mxu0 %v643_v22 }
 0x299   :  { %1298 = vmatpush3.msra.mxu1 %v557_v36  ;;  %1357 = vmatpush3.msra.mxu0 %v643_v22  ;;  %v743_v36 = vld [vmem:[#allocation7 + $0x3d0] sm:$0xff] }
 0x29a   :  { %1299 = vmatprep.subr.mxu1 %v556_v37  ;;  %1358 = vmatprep.subr.mxu0 %v642_v23 }
 0x29b   :  { %1300 = vmatpush3.msra.mxu1 %v556_v37  ;;  %1359 = vmatpush3.msra.mxu0 %v642_v23  ;;  %v959_v37 = vld [vmem:[#allocation7 + $0x320] ss:$0 sm:$0xff] }
 0x29c   :  { %1301 = vmatprep.subr.mxu1 %v555_v38  ;;  %1360 = vmatprep.subr.mxu0 %v641_v24 }
 0x29d   :  { %1302 = vmatpush3.msra.mxu1 %v555_v38  ;;  %1361 = vmatpush3.msra.mxu0 %v641_v24 }
 0x29e   :  { %1303 = vmatprep.subr.mxu1 %v554_v39 }
 0x29f   :  { %1304 = vmatpush3.msra.mxu1 %v554_v39 }
 0x2a0   :  { %1305 = vmatprep.subr.mxu1 %v553_v0 }
 0x2a1   :  { %1306 = vmatpush3.msra.mxu1 %v553_v0 }
 0x2a2   :  { %1307 = vmatprep.subr.mxu1 %v552_v40 }
 0x2a3   :  { %1308 = vmatpush3.msra.mxu1 %v552_v40 }
 0x2a4   :  { %1309 = vmatprep.subr.mxu1 %v551_v41 }
 0x2a5   :  { %1310 = vmatpush3.msra.mxu1 %v551_v41 }
 0x2a6   :  { %1311 = vmatprep.subr.mxu1 %v550_v42 }
 0x2a7   :  { %1312 = vmatpush3.msra.mxu1 %v550_v42 }
 0x2a8   :  { %1313 = vmatprep.subr.mxu1 %v549_v43 }
 0x2a9   :  { %1314 = vmatpush3.msra.mxu1 %v549_v43  ;;  %v742_v43 = vld [vmem:[#allocation7 + $0x3c8] sm:$0xff] }
 0x2aa   :  { %1315 = vmatprep.subr.mxu1 %v548_v44 }
 0x2ab   :  { %1316 = vmatpush3.msra.mxu1 %v548_v44  ;;  %v741_v44 = vld [vmem:[#allocation7 + $0x3c0] sm:$0xff] }
 0x2ac   :  { %1317 = vmatprep.subr.mxu1 %v547_v45 }
 0x2ad   :  { %1318 = vmatpush3.msra.mxu1 %v547_v45  ;;  %v740_v45 = vld [vmem:[#allocation7 + $0x3b8] sm:$0xff] }
 0x2ae   :  { %1319 = vmatprep.subr.mxu1 %v546_v46 }
 0x2af   :  { %1320 = vmatpush3.msra.mxu1 %v546_v46  ;;  %v739_v46 = vld [vmem:[#allocation7 + $0x3b0] sm:$0xff] }
 0x2b0   :  { %1321 = vmatprep.subr.mxu1 %v545_v47 }
 0x2b1   :  { %v1667_v48 = vpop.f32.mrf.mxu0  ;;  %1322 = vmatpush3.msra.mxu1 %v545_v47  ;;  %v852_v47 = vld [vmem:[#allocation7 + $0x4b0] sm:$0xff] }
 0x2b2   :  { %1323 = vmatprep.subr.mxu1 %v544_v49  ;;  %1400 = vmatprep.subr.mxu0 %v852_v47 }
 0x2b3   :  { %v1294_v50 = vpop.f32.mrf.mxu0  ;;  %1324 = vmatpush3.msra.mxu1 %v544_v49  ;;  %v850_v49 = vld [vmem:[#allocation7 + $0x4a0] sm:$0xff] }
 0x2b4   :  { %1325 = vmatprep.subr.mxu1 %v543_v51  ;;  %v849_v50 = vld [vmem:[#allocation7 + $0x498] sm:$0xff] }
 0x2b5   :  { %1326 = vmatpush3.msra.mxu1 %v543_v51  ;;  %v848_v51 = vld [vmem:[#allocation7 + $0x490] sm:$0xff] }
 0x2b6   :  { %1365 = vmatprep.subr.mxu1 %v754_v25 }
 0x356   :  { %v416_v2 = vpop.f32.mrf.mxu1 }
 0x357   :  { %v417_v3 = vadd.f32 %v958_v1, %v416_v2 }
 0x358   :  { %v1259_v4 = vpop.f32.mrf.mxu1 }
 0x359   :  { %1444 = vtanh.f32 %v417_v3  ;;  %v840_v3 = vld [vmem:[#allocation7 + $0x450] sm:$0xff]  ;;  %v839_v4 = vld [vmem:[#allocation7 + $0x448] sm:$0xff] }
 0x366   :  { %v1445_v11 = vpop.eup %1444 }
 0x367   :  { %v515_v12 = vrot.slane %v1445_v11, %v514_v10 }
 0x369   :  { %v516_v14 = vcombine.high %v515_v12, %v515_v12  ;;  %v523_v15 = vrot.slane %v515_v12, %v514_v10 }
 0x36b   :  { %v530_v16 = vrot.slane %v516_v14, %v514_v10  ;;  %v534_v17 = vrot.slane %v523_v15, %v533_v13  ;;  %v962_v14 = vld [vmem:[#allocation7 + $0x4b8] ss:$0 sm:$0xff] }
 0x36d   :  { %v538_v18 = vrot.slane %v530_v16, %v533_v13  ;;  %v541_v19 = vadd.f32 %v534_v17, %v1667_v48 }
 0x36f   :  { %v542_v20 = vadd.f32 %v538_v18, %v1667_v48  ;;  %1327 = vmatprep.mubr.f32.mxu1 %v541_v19  ;;  %v851_v48 = vld [vmem:[#allocation7 + $0x4a8] sm:$0xff] }
 0x371   :  { %1328 = vmatmul.mubr.f32.vlgmr.msra.gmra.mxu1 %v542_v20 }
 0x372   :  { %1366 = vmatpush3.msra.mxu1 %v754_v25 }
 0x373   :  { %1367 = vmatprep.subr.mxu1 %v753_v26 }
 0x374   :  { %1368 = vmatpush3.msra.mxu1 %v753_v26 }
 0x375   :  { %1369 = vmatprep.subr.mxu1 %v752_v27 }
 0x376   :  { %1370 = vmatpush3.msra.mxu1 %v752_v27 }
 0x377   :  { %1371 = vmatprep.subr.mxu1 %v751_v28 }
 0x378   :  { %1372 = vmatpush3.msra.mxu1 %v751_v28 }
 0x379   :  { %1373 = vmatprep.subr.mxu1 %v750_v29 }
 0x37a   :  { %1374 = vmatpush3.msra.mxu1 %v750_v29 }
 0x37b   :  { %1375 = vmatprep.subr.mxu1 %v749_v30 }
 0x37c   :  { %1376 = vmatpush3.msra.mxu1 %v749_v30 }
 0x37d   :  { %1377 = vmatprep.subr.mxu1 %v748_v31 }
 0x37e   :  { %1378 = vmatpush3.msra.mxu1 %v748_v31 }
 0x37f   :  { %1379 = vmatprep.subr.mxu1 %v747_v32 }
 0x380   :  { %1380 = vmatpush3.msra.mxu1 %v747_v32 }
 0x381   :  { %1381 = vmatprep.subr.mxu1 %v746_v33 }
 0x382   :  { %1382 = vmatpush3.msra.mxu1 %v746_v33 }
 0x383   :  { %1383 = vmatprep.subr.mxu1 %v745_v34 }
 0x384   :  { %1384 = vmatpush3.msra.mxu1 %v745_v34 }
 0x385   :  { %1385 = vmatprep.subr.mxu1 %v744_v35 }
 0x386   :  { %1386 = vmatpush3.msra.mxu1 %v744_v35 }
 0x387   :  { %1387 = vmatprep.subr.mxu1 %v743_v36 }
 0x388   :  { %1388 = vmatpush3.msra.mxu1 %v743_v36 }
 0x389   :  { %1389 = vmatprep.subr.mxu1 %v742_v43 }
 0x38a   :  { %1390 = vmatpush3.msra.mxu1 %v742_v43 }
 0x38b   :  { %1391 = vmatprep.subr.mxu1 %v741_v44 }
 0x38c   :  { %1392 = vmatpush3.msra.mxu1 %v741_v44 }
 0x38d   :  { %1393 = vmatprep.subr.mxu1 %v740_v45 }
 0x38e   :  { %1394 = vmatpush3.msra.mxu1 %v740_v45 }
 0x38f   :  { %1395 = vmatprep.subr.mxu1 %v739_v46 }
 0x390   :  { %1396 = vmatpush3.msra.mxu1 %v739_v46 }
 0x431   :  { %v1329_v38 = vpop.f32.mrf.mxu1 }
 0x432   :  { %v636_v39 = vadd.f32 %v1329_v38, %v959_v37 }
 0x433   :  { %v630_v0 = vpop.f32.mrf.mxu1 }
 0x434   :  { %v631_v40 = vadd.f32 %v959_v37, %v630_v0  ;;  %v640_v42 = vmax.f32 %v636_v39, 0.0 }
 0x436   :  { %v639_v41 = vmax.f32 %v631_v40, 0.0 }
 0x438   :  { %1362 = vmatprep.mubr.f32.mxu0 %v639_v41 }
 0x439   :  { %1363 = vmatmul.mubr.f32.vlgmr.msra.gmra.mxu0 %v640_v42 }
 0x43a   :  { %1401 = vmatpush3.msra.mxu0 %v852_v47 }
 0x43b   :  { %1402 = vmatprep.subr.mxu0 %v851_v48 }
 0x43c   :  { %1403 = vmatpush3.msra.mxu0 %v851_v48 }
 0x43d   :  { %1404 = vmatprep.subr.mxu0 %v850_v49 }
 0x43e   :  { %1405 = vmatpush3.msra.mxu0 %v850_v49 }
 0x43f   :  { %1406 = vmatprep.subr.mxu0 %v849_v50 }
 0x440   :  { %1407 = vmatpush3.msra.mxu0 %v849_v50 }
 0x441   :  { %1408 = vmatprep.subr.mxu0 %v848_v51 }
 0x442   :  { %1409 = vmatpush3.msra.mxu0 %v848_v51 }
 0x443   :  { %1410 = vmatprep.subr.mxu0 %v847_v52 }
 0x444   :  { %1411 = vmatpush3.msra.mxu0 %v847_v52 }
 0x445   :  { %1412 = vmatprep.subr.mxu0 %v846_v53 }
 0x446   :  { %1413 = vmatpush3.msra.mxu0 %v846_v53 }
 0x447   :  { %1414 = vmatprep.subr.mxu0 %v845_v54 }
 0x448   :  { %1415 = vmatpush3.msra.mxu0 %v845_v54 }
 0x449   :  { %1416 = vmatprep.subr.mxu0 %v844_v55 }
 0x44a   :  { %1417 = vmatpush3.msra.mxu0 %v844_v55 }
 0x44b   :  { %1418 = vmatprep.subr.mxu0 %v843_v56 }
 0x44c   :  { %1419 = vmatpush3.msra.mxu0 %v843_v56 }
 0x44d   :  { %1420 = vmatprep.subr.mxu0 %v842_v57 }
 0x44e   :  { %1421 = vmatpush3.msra.mxu0 %v842_v57 }
 0x44f   :  { %1422 = vmatprep.subr.mxu0 %v841_v58 }
 0x450   :  { %1423 = vmatpush3.msra.mxu0 %v841_v58 }
 0x451   :  { %1424 = vmatprep.subr.mxu0 %v840_v3 }
 0x452   :  { %1425 = vmatpush3.msra.mxu0 %v840_v3 }
 0x453   :  { %1426 = vmatprep.subr.mxu0 %v839_v4 }
 0x454   :  { %1427 = vmatpush3.msra.mxu0 %v839_v4 }
 0x455   :  { %1428 = vmatprep.subr.mxu0 %v838_v5 }
 0x456   :  { %1429 = vmatpush3.msra.mxu0 %v838_v5 }
 0x457   :  { %1430 = vmatprep.subr.mxu0 %v837_v6 }
 0x458   :  { %1431 = vmatpush3.msra.mxu0 %v837_v6 }
 0x4f9   :  { %v1364_v60 = vpop.f32.mrf.mxu0 }
 0x4fa   :  { %v734_v61 = vadd.f32 %v1364_v60, %v960_v59 }
 0x4fb   :  { %v728_v62 = vpop.f32.mrf.mxu0 }
 0x4fc   :  { %v729_v63 = vadd.f32 %v960_v59, %v728_v62  ;;  %v738_v2 = vmax.f32 %v734_v61, 0.0 }
 0x4fe   :  { %v737_v1 = vmax.f32 %v729_v63, 0.0 }
 0x500   :  { %1397 = vmatprep.mubr.f32.mxu1 %v737_v1 }
 0x501   :  { %1398 = vmatmul.mubr.f32.vlgmr.msra.gmra.mxu1 %v738_v2 }
 0x5c1   :  { %v1399_v8 = vpop.f32.mrf.mxu1 }
 0x5c2   :  { %v832_v9 = vadd.f32 %v1399_v8, %v961_v7 }
 0x5c3   :  { %v826_v10 = vpop.f32.mrf.mxu1 }
 0x5c4   :  { %v827_v11 = vadd.f32 %v961_v7, %v826_v10  ;;  %v836_v13 = vmax.f32 %v832_v9, 0.0 }
 0x5c6   :  { %v835_v12 = vmax.f32 %v827_v11, 0.0 }
 0x5c8   :  { %1432 = vmatprep.mubr.f32.mxu0 %v835_v12 }
 0x5c9   :  { %1433 = vmatmul.mubr.f32.vlgmr.msra.gmra.mxu0 %v836_v13 }
 0x689   :  { %v1434_v15 = vpop.f32.mrf.mxu0 }
 0x68a   :  { %v930_v16 = vadd.f32 %v1434_v15, %v962_v14 }
 0x68b   :  { %v924_v17 = vpop.f32.mrf.mxu0 }
 0x68c   :  { %1446 = vtanh.f32 %v930_v16  ;;  %v925_v18 = vadd.f32 %v962_v14, %v924_v17 }
 0x68e   :  { %1448 = vtanh.f32 %v925_v18 }
 0x699   :  { %v1447_v19 = vpop.eup %1446 }
 0x69a   :  { %936 = vst [vmem:[#allocation8 + $0x8] sm:$0xff] %v1447_v19 }
 0x69b   :  { %v1449_v20 = vpop.eup %1448 }
 0x69c   :  { %935 = vst [vmem:[#allocation8] sm:$0xff] %v1449_v20 }
 0x69d   :  { %1521 = shalt.err (!%p1518_p5)
}
 0x69e   :  { %948 = dma.vmem_to_hbm [thread:$0]  %s943_s2, 256, %s1680_s3, [#allocation4], %s1539_s1, %s1539_s1, %s1540_s25  }
 0x69f   :  { %1534 = dma.done.wait [#allocation4], 256  }
 0x6a0   :  { %1535 = vsyncadd [#allocation4], 4294967040 }
 0x6a1   :  { %952 = vsyncpa [#allocation3], 1 }
 0x6a2   :  { %953 = vsyncpa [#allocation6], 1 }
 0x6a3   :  { %954 = vsyncpa [#allocation4], 1 }

</bundles_post_ra>
